<compile_context>
chip_gen: v5e
topology: v5e:2x2
jax: 0.10.0
libtpu: 0.0.40
codegen_flags: <defaults>
</compile_context>

<pallas_src>
import functools
import math

import jax
import jax.numpy as jnp
from jax import lax
from jax.experimental import pallas as pl
from jax.experimental.pallas import tpu as pltpu

_LANE = 128          # lane width (minor dim)
_SUB = 8             # f32 sublane tile
_CHUNK_ROWS = 1024   # in-kernel processing chunk (bounds f32 intermediates)


def _device_kind():
    try:
        return jax.devices()[0].device_kind.lower()
    except Exception:  # pragma: no cover - defensive fallback
        return ""


def _tuning():
    """Per-chip tuning: (multi_tensorcore, block_bytes_per_input_buffer)."""
    kind = _device_kind()
    # Chips whose TensorCores are both addressable from one pallas_call
    # (v4/v5p megacore, v7x) benefit from a size-2 "parallel" axis.  On
    # single-TC chips (v2/v3/v5e/v6e) that axis only serializes and, for odd
    # block counts, forces a redundant clamped tail block — so keep n_par=1.
    multi_tc = any(t in kind for t in ("v4", "v5p", "7"))
    # Per-input-buffer DMA block budget: 2 inputs x 2 pipeline buffers x this
    # must stay inside scoped VMEM (limit raised to 32 MiB below).  Faster-HBM
    # chips get bigger blocks to amortize the ~0.35 us/step grid overhead.
    if any(t in kind for t in ("v6", "7", "v4", "v5p")):
        block_bytes = 4 * 1024 * 1024
    else:
        block_bytes = 2 * 1024 * 1024
    return multi_tc, block_bytes


def _qloss_kernel(tau_ref, yhat_ref, y_ref, out_ref, *,
                  rows, block_rows, chunk_rows, inner_steps, full_blocks,
                  mask_tail):
    """One (block_rows, 128) tile of the pinball-loss partial sum.

    out_ref is a (1, 8, 128) f32 block that stays resident across the
    reduction axis (grid axis 1) and acts as a per-core vector accumulator.
    """
    i = pl.program_id(0)   # "parallel" axis (both TCs on multi-TC chips)
    j = pl.program_id(1)   # "arbitrary" reduction axis

    @pl.when(j == 0)
    def _():
        out_ref[...] = jnp.zeros_like(out_ref)

    tau = tau_ref[0]
    pos = 1.0 - tau
    neg = -tau
    n_chunks = block_rows // chunk_rows

    def chunk_contrib(c):
        # Static chunk slices of the already-resident VMEM block.
        yh = yhat_ref[pl.ds(c * chunk_rows, chunk_rows), :]
        yy = y_ref[pl.ds(c * chunk_rows, chunk_rows), :]
        # diff in the input dtype (matches the torch module), rest in f32.
        diff = (yh - yy).astype(jnp.float32)
        # (diff >= 0).float() - tau  ==  where(diff >= 0, 1 - tau, -tau)
        return jnp.where(diff >= 0.0, pos, neg) * diff

    def fold(x):
        # (chunk, 128) -> (8, 128): pure VPU adds, no cross-lane (XLU) work.
        return x.reshape(chunk_rows // _SUB, _SUB, _LANE).sum(axis=0)

    def accumulate(masked):
        acc = jnp.zeros((_SUB, _LANE), jnp.float32)
        if masked:
            base = (i * inner_steps + j) * block_rows
            row_ids = lax.broadcasted_iota(jnp.int32, (chunk_rows, _LANE), 0)
        for c in range(n_chunks):
            contrib = chunk_contrib(c)
            if masked:
                start = base + c * chunk_rows
                # select (not multiply) so garbage/NaN in the out-of-bounds
                # region of edge/clamped blocks cannot leak into the sum.
                contrib = jnp.where(start + row_ids < rows, contrib, 0.0)
            acc = acc + fold(contrib)
        out_ref[...] += acc[None, :, :]

    if mask_tail:
        b = i * inner_steps + j

        @pl.when(b < full_blocks)          # full blocks: lean unmasked path
        def _():
            accumulate(masked=False)

        @pl.when(b >= full_blocks)         # ragged last / clamped tail blocks
        def _():
            accumulate(masked=True)
    else:
        accumulate(masked=False)


def quantile_loss(yhat, y, tau):
    """Pallas implementation of QuantileLoss.forward(yhat, y, tau)."""
    assert yhat.shape == y.shape, "yhat and y must have the same shape"
    n = int(math.prod(yhat.shape))
    assert n > 0, "quantile loss of an empty tensor is undefined"

    tau_f = jnp.asarray(tau, jnp.float32)
    flat_yhat = jnp.ravel(yhat)
    flat_y = jnp.ravel(y)

    rem = n % _LANE
    n_main = n - rem

    # Ragged tail (< 128 elements): tiny wrapper-side reduction instead of a
    # full padded copy of both inputs.
    if rem:
        d_tail = (flat_yhat[n_main:] - flat_y[n_main:]).astype(jnp.float32)
        tail_sum = jnp.sum(jnp.where(d_tail >= 0.0, 1.0 - tau_f, -tau_f) * d_tail)
    else:
        tail_sum = jnp.float32(0.0)

    if n_main == 0:
        return tail_sum * (1.0 / n)

    rows = n_main // _LANE
    yh2 = (flat_yhat[:n_main] if rem else flat_yhat).reshape(rows, _LANE)
    y2 = (flat_y[:n_main] if rem else flat_y).reshape(rows, _LANE)

    # Native sublane multiple for the (un-upcast) input dtype:
    # f32 -> 8, bf16/fp16 -> 16, int8/fp8 -> 32.
    itemsize = max(1, min(4, jnp.dtype(yh2.dtype).itemsize))
    unit = _SUB * (4 // itemsize)

    if rows < unit:
        # Tiny input: pad up to one native sublane tile (zero rows add 0).
        yh2 = jnp.pad(yh2, ((0, unit - rows), (0, 0)))
        y2 = jnp.pad(y2, ((0, unit - rows), (0, 0)))
        rows = unit

    multi_tc, block_bytes = _tuning()

    rows_floor = (rows // unit) * unit
    chunk_rows = min(_CHUNK_ROWS, rows_floor)
    max_rows = max(chunk_rows,
                   (block_bytes // (_LANE * itemsize)) // chunk_rows * chunk_rows)
    block_rows = min(max_rows, (rows_floor // chunk_rows) * chunk_rows)

    num_blocks = -(-rows // block_rows)
    full_blocks = rows // block_rows          # blocks with no OOB rows

    n_par = 2 if (multi_tc and num_blocks >= 2) else 1
    inner_steps = -(-num_blocks // n_par)
    total_blocks = n_par * inner_steps
    mask_tail = (total_blocks * block_rows != rows)

    if total_blocks == num_blocks:
        def row_block(i, j):
            return (i * inner_steps + j, 0)
    else:
        # Redundant tail blocks are clamped to the last real block; their rows
        # are fully masked to zero in-kernel.
        def row_block(i, j):
            return (jnp.minimum(i * inner_steps + j, num_blocks - 1), 0)

    kernel = functools.partial(
        _qloss_kernel, rows=rows, block_rows=block_rows, chunk_rows=chunk_rows,
        inner_steps=inner_steps, full_blocks=full_blocks, mask_tail=mask_tail)

    partials = pl.pallas_call(
        kernel,
        out_shape=jax.ShapeDtypeStruct((n_par, _SUB, _LANE), jnp.float32),
        grid=(n_par, inner_steps),
        in_specs=[
            pl.BlockSpec(memory_space=pltpu.MemorySpace.SMEM),   # tau scalar
            pl.BlockSpec((block_rows, _LANE), row_block),        # yhat tiles
            pl.BlockSpec((block_rows, _LANE), row_block),        # y tiles
        ],
        out_specs=pl.BlockSpec((1, _SUB, _LANE), lambda i, j: (i, 0, 0)),
        compiler_params=pltpu.CompilerParams(
            dimension_semantics=("parallel", "arbitrary"),
            vmem_limit_bytes=32 * 1024 * 1024),
    )(jnp.reshape(tau_f, (1,)), yh2, y2)

    # Tiny final cross-lane reduce (n_par * 1024 elements) + mean.
    return (jnp.sum(partials, dtype=jnp.float32) + tail_sum) * (1.0 / n)


def _reference(yhat, y, tau):
    diff = yhat - y
    mask = (diff >= 0).astype(jnp.float32) - tau
    return jnp.mean(mask * diff)


if __name__ == "__main__":
    key = jax.random.PRNGKey(0)
    loss_fn = jax.jit(quantile_loss)   # tau is dynamic: no recompile per tau

    cases = [
        ((2, 4, 16, 16), 0.3, jnp.float32),    # spec example: NCHW, n = 2048
        ((3, 5, 7), 0.75, jnp.float32),        # n < 128: pure tail path
        ((7, 129), 0.6, jnp.float32),          # ragged: kernel prefix + jnp tail
        ((8, 64, 1024), 0.1, jnp.float32),     # single larger block
        ((8, 64, 1024), 0.1, jnp.bfloat16),    # sub-32-bit dtype path
        ((4, 16, 16384), 0.5, jnp.float32),    # multi-block reduction
        ((3, 4096, 128), 0.25, jnp.float32),   # odd block count -> tail paths
    ]

    ok = True
    for shape, tau, dtype in cases:
        key, k1, k2 = jax.random.split(key, 3)
        yhat = jax.random.normal(k1, shape, dtype=jnp.float32).astype(dtype)
        y = jax.random.normal(k2, shape, dtype=jnp.float32).astype(dtype)

        loss = jax.block_until_ready(loss_fn(yhat, y, tau))
        ref = jax.block_until_ready(_reference(yhat, y, tau))

        if not jnp.allclose(loss, ref, rtol=1e-4, atol=1e-6):
            ok = False
            print(f"MISMATCH shape={shape} dtype={dtype} tau={tau}: {loss} vs {ref}")

    if ok:
        print("KERNEL_OK")
</pallas_src>

<mosaic_0001>
module attributes {stable_mosaic.version = 11 : i64} {
  func.func @_qloss_kernel(%arg0: i32, %arg1: i32, %arg2: memref<1xf32, #tpu.memory_space<smem>>, %arg3: memref<16x128xf32, #tpu.memory_space<vmem>>, %arg4: memref<16x128xf32, #tpu.memory_space<vmem>>, %arg5: memref<1x8x128xf32, #tpu.memory_space<vmem>>) attributes {dimension_semantics = [#tpu.dimension_semantics<parallel>, #tpu.dimension_semantics<arbitrary>], iteration_bounds = array<i64: 1, 1>, scalar_prefetch = 0 : i64, scratch_operands = 0 : i64, tpu.core_type = #tpu.core_type<tc>, window_params = [{transform_indices = @transform_0, window_bounds = array<i64: 1>}, {transform_indices = @transform_1, window_bounds = array<i64: 16, 128>}, {transform_indices = @transform_2, window_bounds = array<i64: 16, 128>}, {transform_indices = @transform_3, window_bounds = array<i64: 1, 8, 128>}]} {
    %c0_i32 = arith.constant 0 : i32
    %0 = arith.cmpi eq, %arg1, %c0_i32 : i32
    %1 = arith.extui %0 : i1 to i32
    %c0_i32_0 = arith.constant 0 : i32
    %2 = arith.cmpi ne, %1, %c0_i32_0 : i32
    scf.if %2 {
      %cst_15 = arith.constant 0.000000e+00 : f32
      %23 = vector.broadcast %cst_15 : f32 to vector<1x8x128xf32>
      %c0_16 = arith.constant 0 : index
      %c0_17 = arith.constant 0 : index
      %c0_18 = arith.constant 0 : index
      %24 = vector.load %arg5[%c0_16, %c0_17, %c0_18] : memref<1x8x128xf32, #tpu.memory_space<vmem>>, vector<1x8x128xf32>
      tpu.vector_store %arg5[%c0_16, %c0_17, %c0_18], %23 {strides = array<i32>} : memref<1x8x128xf32, #tpu.memory_space<vmem>>, vector<1x8x128xf32>,
    } else {
    }
    %c0 = arith.constant 0 : index
    %3 = memref.load %arg2[%c0] : memref<1xf32, #tpu.memory_space<smem>>
    %cst = arith.constant 1.000000e+00 : f32
    %4 = arith.subf %cst, %3 : f32
    %cst_1 = arith.constant 0.000000e+00 : f32
    %5 = arith.subf %cst_1, %3 : f32
    %cst_2 = arith.constant 0.000000e+00 : f32
    %6 = vector.broadcast %cst_2 : f32 to vector<8x128xf32>
    %c0_3 = arith.constant 0 : index
    %c0_4 = arith.constant 0 : index
    %7 = vector.load %arg3[%c0_3, %c0_4] : memref<16x128xf32, #tpu.memory_space<vmem>>, vector<16x128xf32>
    %c0_5 = arith.constant 0 : index
    %c0_6 = arith.constant 0 : index
    %8 = vector.load %arg4[%c0_5, %c0_6] : memref<16x128xf32, #tpu.memory_space<vmem>>, vector<16x128xf32>
    %9 = arith.subf %7, %8 : vector<16x128xf32>
    %cst_7 = arith.constant 0.000000e+00 : f32
    %10 = vector.broadcast %cst_7 : f32 to vector<16x128xf32>
    %11 = arith.cmpf oge, %9, %10 : vector<16x128xf32>
    %12 = vector.broadcast %4 : f32 to vector<16x128xf32>
    %13 = vector.broadcast %5 : f32 to vector<16x128xf32>
    %14 = arith.select %11, %12, %13 : vector<16x128xi1>, vector<16x128xf32>
    %15 = arith.mulf %14, %9 : vector<16x128xf32>
    %16 = vector.shape_cast %15 : vector<16x128xf32> to vector<2x8x128xf32>
    %cst_8 = arith.constant dense<0.000000e+00> : vector<8x128xf32>
    %17 = vector.multi_reduction <add>, %16, %cst_8 [0] : vector<2x8x128xf32> to vector<8x128xf32>
    %18 = arith.addf %6, %17 : vector<8x128xf32>
    %c0_9 = arith.constant 0 : index
    %c0_10 = arith.constant 0 : index
    %c0_11 = arith.constant 0 : index
    %19 = vector.load %arg5[%c0_9, %c0_10, %c0_11] : memref<1x8x128xf32, #tpu.memory_space<vmem>>, vector<1x8x128xf32>
    %20 = vector.shape_cast %18 : vector<8x128xf32> to vector<1x8x128xf32>
    %21 = arith.addf %19, %20 : vector<1x8x128xf32>
    %c0_12 = arith.constant 0 : index
    %c0_13 = arith.constant 0 : index
    %c0_14 = arith.constant 0 : index
    %22 = vector.load %arg5[%c0_12, %c0_13, %c0_14] : memref<1x8x128xf32, #tpu.memory_space<vmem>>, vector<1x8x128xf32>
    tpu.vector_store %arg5[%c0_12, %c0_13, %c0_14], %21 {strides = array<i32>} : memref<1x8x128xf32, #tpu.memory_space<vmem>>, vector<1x8x128xf32>,
    return
  }
  func.func @transform_0(%arg0: i32, %arg1: i32) -> i32 {
    %c0_i32 = arith.constant 0 : i32
    %c0_i32_0 = arith.constant 0 : i32
    return %c0_i32 : i32
  }
  func.func @transform_1(%arg0: i32, %arg1: i32) -> (i32, i32) {
    %c1_i32 = arith.constant 1 : i32
    %0 = arith.muli %arg0, %c1_i32 : i32
    %1 = arith.addi %0, %arg1 : i32
    %c0_i32 = arith.constant 0 : i32
    %c0_i32_0 = arith.constant 0 : i32
    return %1, %c0_i32 : i32, i32
  }
  func.func @transform_2(%arg0: i32, %arg1: i32) -> (i32, i32) {
    %c1_i32 = arith.constant 1 : i32
    %0 = arith.muli %arg0, %c1_i32 : i32
    %1 = arith.addi %0, %arg1 : i32
    %c0_i32 = arith.constant 0 : i32
    %c0_i32_0 = arith.constant 0 : i32
    return %1, %c0_i32 : i32, i32
  }
  func.func @transform_3(%arg0: i32, %arg1: i32) -> (i32, i32, i32) {
    %c0_i32 = arith.constant 0 : i32
    %c0_i32_0 = arith.constant 0 : i32
    %c0_i32_1 = arith.constant 0 : i32
    return %arg0, %c0_i32, %c0_i32_0 : i32, i32, i32
  }
}

</mosaic_0001>

<bundles_post_ra>
// kernel: quantile_loss.1
= control target key start
LH: loop header
LB: loop body
LE: loop exit
PB: predicated region body
PF: predicated region fallthrough
CT: control target
= control target key end

     0   :  { %s144_s0 = inlined_call_operand.<no memory space> [shape: f32[1], index: 0, kind: input, shape index: {}]   ;;  %s145_s1 = inlined_call_operand.vmem [shape: f32[16,128], index: 1, kind: input, shape index: {}]   ;;  %s146_s2 = inlined_call_operand.vmem [shape: f32[16,128], index: 2, kind: input, shape index: {}]   ;;  %s147_s3 = inlined_call_operand.vmem [shape: f32[1,8,128], index: 3, kind: output, shape index: {}]  }
   0x1   :  { %s65_s14 = ssub.f32 1.0, %s144_s0  ;;  %v67_v0 = vld [vmem:[%s145_s1] sm:$0xff]  ;;  %v68_v1 = vld [vmem:[%s145_s1 + $0x8] sm:$0xff] }
   0x2   :  { %v69_v2 = vld [vmem:[%s146_s2] sm:$0xff]  ;;  %s66_s23 = ssub.f32 0.0, %s144_s0  ;;  %v70_v3 = vld [vmem:[%s146_s2 + $0x8] sm:$0xff] }
   0x3   :  { %v71_v4 = vsub.f32 %v67_v0, %v69_v2  ;;  %v72_v5 = vsub.f32 %v68_v1, %v70_v3  ;;  %v75_v6 = vstv %s65_s14 }
   0x4   :  { %v76_v7 = vstv %s66_s23 }
   0x5   :  { %vm73_vm0 = vcmp.ge.f32.partialorder %v71_v4, 0.0  ;;  %vm74_vm1 = vcmp.ge.f32.partialorder %v72_v5, 0.0 }
   0x6   :  { %v77_v8 = vsel %vm73_vm0, %v75_v6, %v76_v7  ;;  %v78_v9 = vsel %vm74_vm1, %v75_v6, %v76_v7 }
   0x7   :  { %v79_v10 = vmul.f32 %v77_v8, %v71_v4  ;;  %v80_v11 = vmul.f32 %v78_v9, %v72_v5 }
   0x9   :  { %v81_v12 = vadd.f32 %v80_v11, %v79_v10 }
   0xb   :  { %85 = vst [vmem:[%s147_s3] sm:$0xff] %v81_v12 }

</bundles_post_ra>
